<compile_context>
chip_gen: v7x
topology: tpu7x:2x2x1
jax: 0.10.0
libtpu: 0.0.40
codegen_flags: <defaults>
</compile_context>

<pallas_src>
import jax
import jax.numpy as jnp
import numpy as np
from jax.experimental import pallas as pl
from jax.experimental.pallas import tpu as pltpu


def _identity_dma_kernel(x_hbm, o_hbm, sem):
    # Whole-array HBM -> HBM DMA; a single descriptor saturates HBM bandwidth
    # on every TPU generation for a pure copy.
    cp = pltpu.make_async_copy(x_hbm, o_hbm, sem)
    cp.start()
    cp.wait()


def _identity_copy_pallas(x):
    return pl.pallas_call(
        _identity_dma_kernel,
        out_shape=jax.ShapeDtypeStruct(x.shape, x.dtype),
        in_specs=[pl.BlockSpec(memory_space=pl.ANY)],
        out_specs=pl.BlockSpec(memory_space=pl.ANY),
        scratch_shapes=[pltpu.SemaphoreType.DMA(())],
    )(x)


def decoder_forward(x, *, force_kernel=False):
    """Pallas equivalent of Decoder.forward(x).

    The reference Decoder's nn.ModuleList is empty, so forward is the identity.
    Fast path: return x directly (no pallas_call, zero HBM bytes moved).
    `force_kernel=True` routes through a single HBM->HBM DMA Pallas kernel
    instead -- this is also where real decoder blocks would be fused if the
    ModuleList were ever populated.
    """
    # TODO(synk): if Decoder's ModuleList is ever populated (conv / upsample
    # blocks), implement their compute in the kernel path; with an empty list
    # this module is exactly the identity.
    if not force_kernel:
        return x
    if int(np.prod(x.shape)) == 0:
        # Zero-sized tensors: nothing to copy.
        return x
    return _identity_copy_pallas(x)


if __name__ == "__main__":
    # Decoder's default in_channels is 512, but with an empty ModuleList the
    # forward accepts any NCHW tensor; use a small deterministic shape.
    key = jax.random.PRNGKey(0)
    x = jax.random.normal(key, (2, 4, 16, 16), dtype=jnp.float32)
    expected = np.asarray(x)

    # Fast path (what real callers get): zero-cost identity.
    y_fast = jax.block_until_ready(decoder_forward(x))
    assert y_fast.shape == expected.shape and y_fast.dtype == expected.dtype
    np.testing.assert_array_equal(np.asarray(y_fast), expected)

    # Kernel path: exercise the Pallas HBM->HBM DMA copy once.
    y_kern = jax.block_until_ready(decoder_forward(x, force_kernel=True))
    assert y_kern.shape == expected.shape and y_kern.dtype == expected.dtype
    np.testing.assert_array_equal(np.asarray(y_kern), expected)

    print("KERNEL_OK")
</pallas_src>

<mosaic_0001>
module attributes {stable_mosaic.version = 11 : i64} {
  func.func @_identity_dma_kernel(%arg0: memref<2x4x16x16xf32, #tpu.memory_space<any>>, %arg1: memref<2x4x16x16xf32, #tpu.memory_space<any>>, %arg2: memref<!tpu.dma_semaphore, #tpu.memory_space<semaphore_mem>>) attributes {dimension_semantics = [], scalar_prefetch = 0 : i64, scratch_operands = 1 : i64, tpu.core_type = #tpu.core_type<tc>} {
    tpu.enqueue_dma source(%arg0 : memref<2x4x16x16xf32, #tpu.memory_space<any>>) target(%arg1 : memref<2x4x16x16xf32, #tpu.memory_space<any>>) target_semaphore(%arg2 : memref<!tpu.dma_semaphore, #tpu.memory_space<semaphore_mem>>)
    tpu.wait_dma2 semaphore(%arg2 : memref<!tpu.dma_semaphore, #tpu.memory_space<semaphore_mem>>) src(%arg0 : memref<2x4x16x16xf32, #tpu.memory_space<any>>) dst(%arg1 : memref<2x4x16x16xf32, #tpu.memory_space<any>>)
    return
  }
}

</mosaic_0001>

<bundles_post_ra>
// kernel: tpu_custom_call.1
= control target key start
LH: loop header
LB: loop body
LE: loop exit
PB: predicated region body
PF: predicated region fallthrough
CT: control target
= control target key end

     0   :  { %s36_s6 = smov [#allocation2]   ;;  %s37_s7 = smov [#allocation3]   ;;  %s55_s0 = inlined_call_operand.hbm [shape: f32[2,4,16,16], index: 0, kind: input, shape index: {}]   ;;  %s56_s1 = inlined_call_operand.hbm [shape: f32[2,4,16,16], index: 1, kind: output, shape index: {}]  }
   0x1   :  { %s38_s8 = smov 0  }
   0x2   :  { %18 = dma.general %s55_s0, 2048, %s56_s1, %s36_s6, %s37_s7, [#allocation4], %s38_s8, 0  }
   0x3   :  { %34 = dma.done.wait [#allocation2], 2048 }
   0x4   :  { %35 = vsyncadd [#allocation2], 4294965248 }
   0x5   :  { %24 = vsyncmov [#allocation2] }
   0x8   :  { %s25_s13 = vpop.sfrf %24 }
   0x9   :  { %p30_p0 = scmp.ne.s32.totalorder %s25_s13, 0 }
   0xb   :  { %29 = shalt.err (%p30_p0)  }

</bundles_post_ra>
